<compile_context>
chip_gen: v5e
topology: v5e:2x2
jax: 0.10.0
libtpu: 0.0.40
codegen_flags: <defaults>
</compile_context>

<pallas_src>
import functools
import math

import jax
import jax.numpy as jnp
from jax import lax
from jax.experimental import pallas as pl
from jax.experimental.pallas import tpu as pltpu


_SQRT2_INV = 1.0 / math.sqrt(2.0)


def _round_up(n, m):
    return ((n + m - 1) // m) * m


def _vmem_capacity_bytes():
    """Physical VMEM per TensorCore; conservative (v7x) fallback if query fails."""
    try:
        return int(pltpu.get_tpu_info().vmem_capacity_bytes)
    except Exception:
        return 64 << 20


def _resident_spec(block_shape):
    """BlockSpec for a grid-invariant (weight/bias) input: constant index_map and
    a single VMEM buffer (double-buffering a constant block is pure waste)."""
    index_map = lambda i: (0,) * len(block_shape)
    try:
        return pl.BlockSpec(block_shape, index_map, pipeline_mode=pl.Buffered(1))
    except TypeError:  # older Pallas without pipeline_mode kwarg
        return pl.BlockSpec(block_shape, index_map)


def _mlp_fused_kernel(x_ref, *refs, num_layers, compute_dtype, approx_gelu):
    """Fused MLP on one batch tile.

    refs = (w_0, b_0, w_1, b_1, ..., w_{L-1}, b_{L-1}, o_ref)
    All feature dims are pre-padded to multiples of 128 (lane-dense); the
    intermediate activations never leave VMEM/vregs.
    """
    o_ref = refs[-1]
    h = x_ref[...]
    if h.dtype != jnp.float32:
        h = h.astype(jnp.float32)
    for l in range(num_layers):
        w = refs[2 * l][...]            # already stored in compute_dtype
        b = refs[2 * l + 1][...]        # (1, dout_l) f32, broadcasts over rows
        lhs = h if h.dtype == compute_dtype else h.astype(compute_dtype)
        h = jnp.dot(lhs, w, preferred_element_type=jnp.float32) + b
        if l < num_layers - 1:
            if approx_gelu:
                # tanh GELU -> EUP slot (opt-in, slightly different numerics)
                h = jax.nn.gelu(h, approximate=True)
            else:
                # exact GELU: 0.5*h*(1+erf(h/sqrt(2))) == torch.nn.GELU() default
                h = 0.5 * h * (1.0 + lax.erf(h * _SQRT2_INV))
            # dropout(p=0) -> identity
    o_ref[...] = h if h.dtype == o_ref.dtype else h.astype(o_ref.dtype)


def prepare_mlp_params(params, *, compute_dtype=jnp.float32):
    """Pad weights/biases to 128-lane multiples ONCE and cast weights to the MXU
    compute dtype (biases stay f32).  Reuse the result across forward calls."""
    dims = [params[0][0].shape[0]] + [w.shape[1] for (w, _) in params]
    dims_p = tuple(_round_up(d, 128) for d in dims)
    padded = []
    for l, (w, b) in enumerate(params):
        din, dout = w.shape
        dpin, dpout = dims_p[l], dims_p[l + 1]
        padded.append(jnp.pad(w, ((0, dpin - din), (0, dpout - dout)))
                      .astype(compute_dtype))
        padded.append(jnp.pad(jnp.reshape(b, (1, -1)), ((0, 0), (0, dpout - dout)))
                      .astype(jnp.float32))
    return tuple(padded), dims_p, dims[-1]


def _mlp_forward_padded(x, padded_wb, *, dims_p, dim_output, num_layers,
                        compute_dtype, approx_gelu, tile_m):
    B, Din = x.shape

    vmem_cap = _vmem_capacity_bytes()
    # Never request the full physical capacity; leave headroom for Mosaic scratch.
    vmem_limit = min(int(vmem_cap * 0.85), vmem_cap - (8 << 20))

    if tile_m is None:
        tile_m = 512 if vmem_cap >= (96 << 20) else 256

    B8 = _round_up(B, 8)
    tm = min(_round_up(tile_m, 8), B8)
    # Give the "parallel" batch grid >= 2 steps when possible so both v7x
    # TensorCores get work (harmless on single-TC v5e/v6e).
    if B8 <= tm and B8 >= 16:
        tm = _round_up((B8 + 1) // 2, 8)

    itemsize = jnp.dtype(x.dtype).itemsize
    wb_bytes = sum(int(a.size) * jnp.dtype(a.dtype).itemsize for a in padded_wb)

    def _tiles_bytes(t):  # double-buffered x / out activation tiles
        return 2 * t * dims_p[0] * itemsize + 2 * t * dims_p[-1] * itemsize

    while tm > 8 and wb_bytes + _tiles_bytes(tm) > vmem_limit:
        tm = max(8, _round_up(tm // 2, 8))
    # TODO(synk): if wb_bytes alone exceeds the VMEM budget (very large hidden
    # dims), stream weight column blocks (K/N tiling via pltpu.emit_pipeline)
    # instead of keeping every layer fully resident.

    Bp = _round_up(B8, tm)
    x_p = jnp.pad(x, ((0, Bp - B), (0, dims_p[0] - Din)))

    x_spec = pl.BlockSpec((tm, dims_p[0]), lambda i: (i, 0))
    wb_specs = []
    for l in range(num_layers):
        dpin, dpout = dims_p[l], dims_p[l + 1]
        wb_specs.append(_resident_spec((dpin, dpout)))   # resident weight
        wb_specs.append(_resident_spec((1, dpout)))      # resident bias
    out_spec = pl.BlockSpec((tm, dims_p[-1]), lambda i: (i, 0))

    flops = 2 * Bp * sum(dims_p[l] * dims_p[l + 1] for l in range(num_layers))
    transcendentals = Bp * sum(dims_p[1:-1])
    bytes_accessed = (x_p.size * itemsize + wb_bytes
                      + Bp * dims_p[-1] * itemsize)

    out_p = pl.pallas_call(
        functools.partial(_mlp_fused_kernel, num_layers=num_layers,
                          compute_dtype=compute_dtype, approx_gelu=approx_gelu),
        out_shape=jax.ShapeDtypeStruct((Bp, dims_p[-1]), x.dtype),
        grid=(Bp // tm,),
        in_specs=[x_spec] + wb_specs,
        out_specs=out_spec,
        compiler_params=pltpu.CompilerParams(
            dimension_semantics=("parallel",),
            vmem_limit_bytes=vmem_limit,
        ),
        cost_estimate=pl.CostEstimate(
            flops=flops,
            transcendentals=transcendentals,
            bytes_accessed=bytes_accessed,
        ),
    )(x_p, *padded_wb)

    return out_p[:B, :dim_output]


def make_mlp_forward(params, *, compute_dtype=jnp.float32, approx_gelu=False,
                     tile_m=None):
    """Build a jitted forward(x).  Params are padded / cast exactly once here."""
    padded_wb, dims_p, dim_output = prepare_mlp_params(
        params, compute_dtype=compute_dtype)
    num_layers = len(params)
    fwd = jax.jit(functools.partial(
        _mlp_forward_padded, dims_p=dims_p, dim_output=dim_output,
        num_layers=num_layers, compute_dtype=compute_dtype,
        approx_gelu=approx_gelu, tile_m=tile_m))
    return lambda x: fwd(x, padded_wb)


def init_mlp_params(key, dim_input, dim_hidden, dim_output, num_layers):
    """Deterministic init matching MLP.initialize: weight ~ N(0, 0.02), bias = 0.
    Weights stored as [dim_in, dim_out] so the kernel computes x @ W + b."""
    assert num_layers > 0
    if num_layers == 1:
        dims = [(dim_input, dim_output)]
    else:
        dims = ([(dim_input, dim_hidden)]
                + [(dim_hidden, dim_hidden)] * (num_layers - 2)
                + [(dim_hidden, dim_output)])
    params = []
    for (din, dout) in dims:
        key, wkey = jax.random.split(key)
        w = 0.02 * jax.random.normal(wkey, (din, dout), dtype=jnp.float32)
        b = jnp.zeros((1, dout), dtype=jnp.float32)
        params.append((w, b))
    return params


if __name__ == "__main__":
    dim_input, dim_hidden, dim_output, num_layers = 16, 32, 8, 3
    batch = 8

    key = jax.random.PRNGKey(0)
    key, xkey = jax.random.split(key)
    x = jax.random.normal(xkey, (batch, dim_input), dtype=jnp.float32)
    params = init_mlp_params(key, dim_input, dim_hidden, dim_output, num_layers)

    # pure-JAX reference (exact erf GELU, matching torch.nn.GELU() default)
    ref = x
    for (w, b) in params[:-1]:
        ref = jax.nn.gelu(ref @ w + b, approximate=False)
    ref = ref @ params[-1][0] + params[-1][1]

    # default path: f32 MXU operands, exact erf GELU -> matches the reference
    fwd = make_mlp_forward(params)
    out = jax.block_until_ready(fwd(x))
    assert out.shape == (batch, dim_output)
    assert jnp.allclose(out, ref, atol=1e-5, rtol=1e-5)

    # opt-in fast path: bf16 MXU operands (f32 accumulation) + tanh GELU
    fwd_fast = make_mlp_forward(params, compute_dtype=jnp.bfloat16,
                                approx_gelu=True)
    out_fast = jax.block_until_ready(fwd_fast(x))
    assert out_fast.shape == (batch, dim_output)
    assert bool(jnp.all(jnp.isfinite(out_fast)))
    assert jnp.allclose(out_fast, ref, atol=5e-2, rtol=5e-2)

    print("KERNEL_OK")
</pallas_src>

<mosaic_0001>
module attributes {stable_mosaic.version = 11 : i64} {
  func.func @_mlp_fused_kernel(%arg0: i32, %arg1: memref<8x128xf32, #tpu.memory_space<vmem>>, %arg2: memref<128x128xf32, #tpu.memory_space<vmem>>, %arg3: memref<1x128xf32, #tpu.memory_space<vmem>>, %arg4: memref<128x128xf32, #tpu.memory_space<vmem>>, %arg5: memref<1x128xf32, #tpu.memory_space<vmem>>, %arg6: memref<128x128xf32, #tpu.memory_space<vmem>>, %arg7: memref<1x128xf32, #tpu.memory_space<vmem>>, %arg8: memref<8x128xf32, #tpu.memory_space<vmem>>) attributes {dimension_semantics = [#tpu.dimension_semantics<parallel>], iteration_bounds = array<i64: 1>, scalar_prefetch = 0 : i64, scratch_operands = 0 : i64, tpu.core_type = #tpu.core_type<tc>, window_params = [{transform_indices = @transform_0, window_bounds = array<i64: 8, 128>}, {pipeline_mode = #tpu.pipeline_mode<synchronous>, transform_indices = @transform_1, window_bounds = array<i64: 128, 128>}, {pipeline_mode = #tpu.pipeline_mode<synchronous>, transform_indices = @transform_2, window_bounds = array<i64: 1, 128>}, {pipeline_mode = #tpu.pipeline_mode<synchronous>, transform_indices = @transform_3, window_bounds = array<i64: 128, 128>}, {pipeline_mode = #tpu.pipeline_mode<synchronous>, transform_indices = @transform_4, window_bounds = array<i64: 1, 128>}, {pipeline_mode = #tpu.pipeline_mode<synchronous>, transform_indices = @transform_5, window_bounds = array<i64: 128, 128>}, {pipeline_mode = #tpu.pipeline_mode<synchronous>, transform_indices = @transform_6, window_bounds = array<i64: 1, 128>}, {transform_indices = @transform_7, window_bounds = array<i64: 8, 128>}]} {
    %c0 = arith.constant 0 : index
    %c0_0 = arith.constant 0 : index
    %0 = vector.load %arg1[%c0, %c0_0] : memref<8x128xf32, #tpu.memory_space<vmem>>, vector<8x128xf32>
    %c0_1 = arith.constant 0 : index
    %c0_2 = arith.constant 0 : index
    %1 = vector.load %arg2[%c0_1, %c0_2] : memref<128x128xf32, #tpu.memory_space<vmem>>, vector<128x128xf32>
    %c0_3 = arith.constant 0 : index
    %c0_4 = arith.constant 0 : index
    %2 = vector.load %arg3[%c0_3, %c0_4] : memref<1x128xf32, #tpu.memory_space<vmem>>, vector<1x128xf32>
    %cst = arith.constant dense<0.000000e+00> : vector<8x128xf32>
    %3 = tpu.matmul %0, %1, %cst {dimension_numbers = #tpu.dot_dimension_numbers<[1], [0], [0], [1], [0, 0, 1, 1], [], []>} : vector<8x128xf32>, vector<128x128xf32>, vector<8x128xf32> -> vector<8x128xf32>
    %4 = vector.broadcast %2 : vector<1x128xf32> to vector<8x128xf32>
    %5 = arith.addf %3, %4 : vector<8x128xf32>
    %cst_5 = arith.constant 5.000000e-01 : f32
    %6 = vector.broadcast %cst_5 : f32 to vector<8x128xf32>
    %7 = arith.mulf %6, %5 : vector<8x128xf32>
    %cst_6 = arith.constant 0.707106769 : f32
    %8 = vector.broadcast %cst_6 : f32 to vector<8x128xf32>
    %9 = arith.mulf %5, %8 : vector<8x128xf32>
    %10 = math.erf %9 : vector<8x128xf32>
    %cst_7 = arith.constant 1.000000e+00 : f32
    %11 = vector.broadcast %cst_7 : f32 to vector<8x128xf32>
    %12 = arith.addf %11, %10 : vector<8x128xf32>
    %13 = arith.mulf %7, %12 : vector<8x128xf32>
    %c0_8 = arith.constant 0 : index
    %c0_9 = arith.constant 0 : index
    %14 = vector.load %arg4[%c0_8, %c0_9] : memref<128x128xf32, #tpu.memory_space<vmem>>, vector<128x128xf32>
    %c0_10 = arith.constant 0 : index
    %c0_11 = arith.constant 0 : index
    %15 = vector.load %arg5[%c0_10, %c0_11] : memref<1x128xf32, #tpu.memory_space<vmem>>, vector<1x128xf32>
    %cst_12 = arith.constant dense<0.000000e+00> : vector<8x128xf32>
    %16 = tpu.matmul %13, %14, %cst_12 {dimension_numbers = #tpu.dot_dimension_numbers<[1], [0], [0], [1], [0, 0, 1, 1], [], []>} : vector<8x128xf32>, vector<128x128xf32>, vector<8x128xf32> -> vector<8x128xf32>
    %17 = vector.broadcast %15 : vector<1x128xf32> to vector<8x128xf32>
    %18 = arith.addf %16, %17 : vector<8x128xf32>
    %cst_13 = arith.constant 5.000000e-01 : f32
    %19 = vector.broadcast %cst_13 : f32 to vector<8x128xf32>
    %20 = arith.mulf %19, %18 : vector<8x128xf32>
    %cst_14 = arith.constant 0.707106769 : f32
    %21 = vector.broadcast %cst_14 : f32 to vector<8x128xf32>
    %22 = arith.mulf %18, %21 : vector<8x128xf32>
    %23 = math.erf %22 : vector<8x128xf32>
    %cst_15 = arith.constant 1.000000e+00 : f32
    %24 = vector.broadcast %cst_15 : f32 to vector<8x128xf32>
    %25 = arith.addf %24, %23 : vector<8x128xf32>
    %26 = arith.mulf %20, %25 : vector<8x128xf32>
    %c0_16 = arith.constant 0 : index
    %c0_17 = arith.constant 0 : index
    %27 = vector.load %arg6[%c0_16, %c0_17] : memref<128x128xf32, #tpu.memory_space<vmem>>, vector<128x128xf32>
    %c0_18 = arith.constant 0 : index
    %c0_19 = arith.constant 0 : index
    %28 = vector.load %arg7[%c0_18, %c0_19] : memref<1x128xf32, #tpu.memory_space<vmem>>, vector<1x128xf32>
    %cst_20 = arith.constant dense<0.000000e+00> : vector<8x128xf32>
    %29 = tpu.matmul %26, %27, %cst_20 {dimension_numbers = #tpu.dot_dimension_numbers<[1], [0], [0], [1], [0, 0, 1, 1], [], []>} : vector<8x128xf32>, vector<128x128xf32>, vector<8x128xf32> -> vector<8x128xf32>
    %30 = vector.broadcast %28 : vector<1x128xf32> to vector<8x128xf32>
    %31 = arith.addf %29, %30 : vector<8x128xf32>
    %c0_21 = arith.constant 0 : index
    %c0_22 = arith.constant 0 : index
    %32 = vector.load %arg8[%c0_21, %c0_22] : memref<8x128xf32, #tpu.memory_space<vmem>>, vector<8x128xf32>
    tpu.vector_store %arg8[%c0_21, %c0_22], %31 {strides = array<i32>} : memref<8x128xf32, #tpu.memory_space<vmem>>, vector<8x128xf32>,
    return
  }
  func.func @transform_0(%arg0: i32) -> (i32, i32) {
    %c0_i32 = arith.constant 0 : i32
    %c0_i32_0 = arith.constant 0 : i32
    return %arg0, %c0_i32 : i32, i32
  }
  func.func @transform_1(%arg0: i32) -> (i32, i32) {
    %c0_i32 = arith.constant 0 : i32
    %c0_i32_0 = arith.constant 0 : i32
    %c0_i32_1 = arith.constant 0 : i32
    return %c0_i32, %c0_i32_0 : i32, i32
  }
  func.func @transform_2(%arg0: i32) -> (i32, i32) {
    %c0_i32 = arith.constant 0 : i32
    %c0_i32_0 = arith.constant 0 : i32
    %c0_i32_1 = arith.constant 0 : i32
    return %c0_i32, %c0_i32_0 : i32, i32
  }
  func.func @transform_3(%arg0: i32) -> (i32, i32) {
    %c0_i32 = arith.constant 0 : i32
    %c0_i32_0 = arith.constant 0 : i32
    %c0_i32_1 = arith.constant 0 : i32
    return %c0_i32, %c0_i32_0 : i32, i32
  }
  func.func @transform_4(%arg0: i32) -> (i32, i32) {
    %c0_i32 = arith.constant 0 : i32
    %c0_i32_0 = arith.constant 0 : i32
    %c0_i32_1 = arith.constant 0 : i32
    return %c0_i32, %c0_i32_0 : i32, i32
  }
  func.func @transform_5(%arg0: i32) -> (i32, i32) {
    %c0_i32 = arith.constant 0 : i32
    %c0_i32_0 = arith.constant 0 : i32
    %c0_i32_1 = arith.constant 0 : i32
    return %c0_i32, %c0_i32_0 : i32, i32
  }
  func.func @transform_6(%arg0: i32) -> (i32, i32) {
    %c0_i32 = arith.constant 0 : i32
    %c0_i32_0 = arith.constant 0 : i32
    %c0_i32_1 = arith.constant 0 : i32
    return %c0_i32, %c0_i32_0 : i32, i32
  }
  func.func @transform_7(%arg0: i32) -> (i32, i32) {
    %c0_i32 = arith.constant 0 : i32
    %c0_i32_0 = arith.constant 0 : i32
    return %arg0, %c0_i32 : i32, i32
  }
}

</mosaic_0001>

<bundles_post_ra>
// kernel: _mlp_forward_padded.1
= control target key start
LH: loop header
LB: loop body
LE: loop exit
PB: predicated region body
PF: predicated region fallthrough
CT: control target
= control target key end

     0   :  { %12 = vsyncpa [#allocation3], 0  ;;  %s489_s0 = inlined_call_operand.vmem [shape: f32[8,128], index: 0, kind: input, shape index: {}]   ;;  %s490_s1 = inlined_call_operand.hbm [shape: f32[128,128], index: 1, kind: input, shape index: {}]   ;;  %s491_s2 = inlined_call_operand.vmem [shape: f32[1,128], index: 2, kind: input, shape index: {}]   ;;  %s492_s3 = inlined_call_operand.hbm [shape: f32[128,128], index: 3, kind: input, shape index: {}]   ;;  %s493_s4 = inlined_call_operand.vmem [shape: f32[1,128], index: 4, kind: input, shape index: {}]   ;;  %s494_s5 = inlined_call_operand.hbm [shape: f32[128,128], index: 5, kind: input, shape index: {}]   ;;  %s495_s6 = inlined_call_operand.vmem [shape: f32[1,128], index: 6, kind: input, shape index: {}]   ;;  %s496_s7 = inlined_call_operand.hbm [shape: f32[8,128], index: 7, kind: output, shape index: {}]  }
   0x1   :  { %13 = vsyncpa [#allocation6], 0 }
   0x2   :  { %14 = vsyncpa [#allocation4], 0  ;;  %s36_s26 = sshll.u32 %s492_s3, 4  ;;  %s419_s27 = smov [#allocation5]   ;;  %s37_s26 = int_to_ptr.hbm [resolvable:$true] %s36_s26 }
   0x3   :  { %s38_s28 = sshll.u32 %s419_s27, 4  ;;  %s21_s8 = sshll.u32 %s490_s1, 4  ;;  %s39_s28 = int_to_ptr.vmem [resolvable:$true] %s38_s28  ;;  %s22_s8 = int_to_ptr.hbm [resolvable:$true] %s21_s8 }
   0x4   :  { %s420_s9 = smov 128   ;;  %s421_s10 = smov 8  }
   0x5   :  { %44 = dma.hbm_to_vmem [thread:$0]  %s37_s26, 2048, %s39_s28, [#allocation6], %s420_s9, %s420_s9, %s421_s10  }
   0x6   :  { %s422_s11 = smov [#allocation2]   ;;  %s51_s15 = sshll.u32 %s494_s5, 4  ;;  %s52_s15 = int_to_ptr.hbm [resolvable:$true] %s51_s15 }
   0x7   :  { %s23_s12 = sshll.u32 %s422_s11, 4  ;;  %s423_s3 = smov [#allocation7]   ;;  %s24_s12 = int_to_ptr.vmem [resolvable:$true] %s23_s12 }
   0x8   :  { %29 = dma.hbm_to_vmem [thread:$0]  %s22_s8, 2048, %s24_s12, [#allocation3], %s420_s9, %s420_s9, %s421_s10  }
   0x9   :  { %s53_s16 = sshll.u32 %s423_s3, 4  ;;  %s54_s16 = int_to_ptr.vmem [resolvable:$true] %s53_s16 }
   0xa   :  { %59 = dma.hbm_to_vmem [thread:$0]  %s52_s15, 2048, %s54_s16, [#allocation6], %s420_s9, %s420_s9, %s421_s10  }
   0xb   :  { %413 = dma.done.wait [#allocation3], 2048  }
   0xc   :  { %414 = vsyncadd [#allocation3], 4294965248 }
   0xd   :  { %415 = dma.done.wait [#allocation6], 4096  }
   0xe   :  { %416 = vsyncadd [#allocation6], 4294963200  ;;  %v90_v0 = vld [vmem:[#allocation2 + $0x78] sm:$0xff]  ;;  %v89_v1 = vld [vmem:[#allocation2 + $0x70] sm:$0xff]  ;;  %s424_s20 = smov [#allocation8]   ;;  %s291_s24 = sshll.u32 %s496_s7, 4  ;;  %s292_s24 = int_to_ptr.hbm [resolvable:$true] %s291_s24 }
   0xf   :  { %95 = vmatpush.msra.mxu0 %v90_v0  ;;  %v88_v2 = vld [vmem:[#allocation2 + $0x68] sm:$0xff]  ;;  %v87_v3 = vld [vmem:[#allocation2 + $0x60] sm:$0xff]  ;;  %v86_v4 = vld [vmem:[#allocation2 + $0x58] sm:$0xff]  ;;  %s289_s21 = sshll.u32 %s424_s20, 4  ;;  %s290_s21 = int_to_ptr.vmem [resolvable:$true] %s289_s21 }
  0x10   :  { %v85_v5 = vld [vmem:[#allocation2 + $0x50] sm:$0xff]  ;;  %v84_v6 = vld [vmem:[#allocation2 + $0x48] sm:$0xff]  ;;  %v83_v7 = vld [vmem:[#allocation2 + $0x40] sm:$0xff] }
  0x11   :  { %96 = vmatpush.msra.mxu0 %v89_v1  ;;  %v82_v8 = vld [vmem:[#allocation2 + $0x38] sm:$0xff]  ;;  %v81_v9 = vld [vmem:[#allocation2 + $0x30] sm:$0xff]  ;;  %v80_v10 = vld [vmem:[#allocation2 + $0x28] sm:$0xff] }
  0x12   :  { %v79_v11 = vld [vmem:[#allocation2 + $0x20] sm:$0xff]  ;;  %v78_v12 = vld [vmem:[#allocation2 + $0x18] sm:$0xff]  ;;  %v77_v13 = vld [vmem:[#allocation2 + $0x10] sm:$0xff] }
  0x13   :  { %97 = vmatpush.msra.mxu0 %v88_v2  ;;  %v76_v14 = vld [vmem:[#allocation2 + $0x8] sm:$0xff]  ;;  %v75_v15 = vld [vmem:[#allocation2] sm:$0xff]  ;;  %v174_v17 = vld [vmem:[#allocation5 + $0x78] sm:$0xff] }
  0x14   :  { %v74_v16 = vld [vmem:[%s489_s0] sm:$0xff]  ;;  %179 = vmatpush.msra.mxu1 %v174_v17  ;;  %v173_v18 = vld [vmem:[#allocation5 + $0x70] sm:$0xff]  ;;  %v172_v19 = vld [vmem:[#allocation5 + $0x68] sm:$0xff] }
  0x15   :  { %98 = vmatpush.msra.mxu0 %v87_v3  ;;  %v171_v20 = vld [vmem:[#allocation5 + $0x60] sm:$0xff]  ;;  %v170_v22 = vld [vmem:[#allocation5 + $0x58] sm:$0xff]  ;;  %v169_v23 = vld [vmem:[#allocation5 + $0x50] sm:$0xff] }
  0x16   :  { %180 = vmatpush.msra.mxu1 %v173_v18  ;;  %v310_v21 = vld [vmem:[%s491_s2] ss:$0 sm:$0xff]  ;;  %v168_v25 = vld [vmem:[#allocation5 + $0x48] sm:$0xff]  ;;  %v166_v29 = vld [vmem:[#allocation5 + $0x38] sm:$0xff] }
  0x17   :  { %99 = vmatpush.msra.mxu0 %v86_v4  ;;  %v167_v27 = vld [vmem:[#allocation5 + $0x40] sm:$0xff]  ;;  %v165_v31 = vld [vmem:[#allocation5 + $0x30] sm:$0xff]  ;;  %v164_v33 = vld [vmem:[#allocation5 + $0x28] sm:$0xff] }
  0x18   :  { %181 = vmatpush.msra.mxu1 %v172_v19  ;;  %v163_v36 = vld [vmem:[#allocation5 + $0x20] sm:$0xff]  ;;  %v162_v39 = vld [vmem:[#allocation5 + $0x18] sm:$0xff]  ;;  %v161_v42 = vld [vmem:[#allocation5 + $0x10] sm:$0xff] }
  0x19   :  { %100 = vmatpush.msra.mxu0 %v85_v5  ;;  %v160_v45 = vld [vmem:[#allocation5 + $0x8] sm:$0xff]  ;;  %v159_v47 = vld [vmem:[#allocation5] sm:$0xff]  ;;  %v253_v17 = vld [vmem:[#allocation7 + $0x50] sm:$0xff] }
  0x1a   :  { %182 = vmatpush.msra.mxu1 %v171_v20  ;;  %v252_v20 = vld [vmem:[#allocation7 + $0x48] sm:$0xff] }
  0x1b   :  { %101 = vmatpush.msra.mxu0 %v84_v6 }
  0x1c   :  { %183 = vmatpush.msra.mxu1 %v170_v22  ;;  %v251_v22 = vld [vmem:[#allocation7 + $0x40] sm:$0xff] }
  0x1d   :  { %102 = vmatpush.msra.mxu0 %v83_v7 }
  0x1e   :  { %184 = vmatpush.msra.mxu1 %v169_v23 }
  0x1f   :  { %103 = vmatpush.msra.mxu0 %v82_v8 }
  0x20   :  { %185 = vmatpush.msra.mxu1 %v168_v25 }
  0x21   :  { %104 = vmatpush.msra.mxu0 %v81_v9 }
  0x22   :  { %186 = vmatpush.msra.mxu1 %v167_v27 }
  0x23   :  { %105 = vmatpush.msra.mxu0 %v80_v10 }
  0x24   :  { %187 = vmatpush.msra.mxu1 %v166_v29 }
  0x25   :  { %106 = vmatpush.msra.mxu0 %v79_v11  ;;  %v258_v11 = vld [vmem:[#allocation7 + $0x78] sm:$0xff] }
  0x26   :  { %188 = vmatpush.msra.mxu1 %v165_v31  ;;  %263 = vmatpush.msra.mxu2 %v258_v11  ;;  %v247_v31 = vld [vmem:[#allocation7 + $0x20] sm:$0xff] }
  0x27   :  { %107 = vmatpush.msra.mxu0 %v78_v12  ;;  %v257_v12 = vld [vmem:[#allocation7 + $0x70] sm:$0xff] }
  0x28   :  { %189 = vmatpush.msra.mxu1 %v164_v33  ;;  %264 = vmatpush.msra.mxu2 %v257_v12 }
  0x29   :  { %108 = vmatpush.msra.mxu0 %v77_v13  ;;  %v256_v13 = vld [vmem:[#allocation7 + $0x68] sm:$0xff] }
  0x2a   :  { %190 = vmatpush.msra.mxu1 %v163_v36  ;;  %265 = vmatpush.msra.mxu2 %v256_v13  ;;  %v245_v36 = vld [vmem:[#allocation7 + $0x10] sm:$0xff] }
  0x2b   :  { %109 = vmatpush.msra.mxu0 %v76_v14  ;;  %v311_v14 = vld [vmem:[%s493_s4] ss:$0 sm:$0xff] }
  0x2c   :  { %191 = vmatpush.msra.mxu1 %v162_v39  ;;  %v244_v39 = vld [vmem:[#allocation7 + $0x8] sm:$0xff] }
  0x2d   :  { %110 = vmatpush.msra.mxu0 %v75_v15  ;;  %v255_v15 = vld [vmem:[#allocation7 + $0x60] sm:$0xff] }
  0x2e   :  { %111 = vmatmul.f32.vlgmr.msra.gmra.mxu0 %v74_v16  ;;  %192 = vmatpush.msra.mxu1 %v161_v42  ;;  %v254_v16 = vld [vmem:[#allocation7 + $0x58] sm:$0xff] }
  0x2f   :  { %266 = vmatpush.msra.mxu2 %v255_v15 }
  0x30   :  { %193 = vmatpush.msra.mxu1 %v160_v45 }
  0x31   :  { %267 = vmatpush.msra.mxu2 %v254_v16 }
  0x32   :  { %194 = vmatpush.msra.mxu1 %v159_v47 }
  0x33   :  { %268 = vmatpush.msra.mxu2 %v253_v17 }
  0x35   :  { %269 = vmatpush.msra.mxu2 %v252_v20 }
  0x37   :  { %270 = vmatpush.msra.mxu2 %v251_v22 }
  0xab   :  { %v112_v24 = vpop.f32.mrf.mxu0 }
  0xac   :  { %v113_v26 = vadd.f32 %v310_v21, %v112_v24  ;;  %v250_v24 = vld [vmem:[#allocation7 + $0x38] sm:$0xff] }
  0xad   :  { %271 = vmatpush.msra.mxu2 %v250_v24 }
  0xae   :  { %v116_v28 = vmul.f32 0.70710677, %v113_v26  ;;  %v115_v8 = vmul.f32 0.5, %v113_v26  ;;  %v249_v26 = vld [vmem:[#allocation7 + $0x30] sm:$0xff] }
  0xaf   :  { %272 = vmatpush.msra.mxu2 %v249_v26 }
  0xb0   :  { %v117_v30 = vmul.f32 %v116_v28, %v116_v28 }
  0xb2   :  { %v118_v32 = vmin.f32 %v117_v30, 16.0 }
  0xb4   :  { %v119_v34 = vmul.f32 2.1237322e-06, %v118_v32  ;;  %v130_v35 = vmul.f32 3.8918573e-05, %v118_v32 }
  0xb6   :  { %v120_v37 = vadd.f32 0.00028619796, %v119_v34  ;;  %v131_v38 = vadd.f32 0.001143296, %v130_v35  ;;  %v246_v34 = vld [vmem:[#allocation7 + $0x18] sm:$0xff] }
  0xb8   :  { %v121_v40 = vmul.f32 %v120_v37, %v118_v32  ;;  %v132_v41 = vmul.f32 %v131_v38, %v118_v32 }
  0xba   :  { %v133_v43 = vadd.f32 0.014752088, %v132_v41  ;;  %v122_v44 = vadd.f32 0.0036580483, %v121_v40  ;;  %v243_v41 = vld [vmem:[#allocation7] sm:$0xff] }
  0xbc   :  { %v134_v46 = vmul.f32 %v133_v43, %v118_v32  ;;  %v123_v49 = vmul.f32 %v122_v44, %v118_v32 }
  0xbe   :  { %v135_v48 = vadd.f32 0.112945676, %v134_v46  ;;  %v124_v52 = vadd.f32 0.05243302, %v123_v49 }
  0xc0   :  { %v136_v50 = vmul.f32 %v135_v48, %v118_v32  ;;  %v125_v55 = vmul.f32 %v124_v52, %v118_v32 }
  0xc2   :  { %v137_v51 = vadd.f32 0.4994258, %v136_v50  ;;  %v126_v56 = vadd.f32 0.18741608, %v125_v55 }
  0xc4   :  { %v138_v53 = vmul.f32 %v137_v51, %v118_v32  ;;  %v127_v58 = vmul.f32 %v126_v56, %v118_v32 }
  0xc6   :  { %v139_v54 = vadd.f32 1.0, %v138_v53  ;;  %v128_v62 = vadd.f32 1.1283791, %v127_v58 }
  0xc8   :  { %313 = vrcp.f32 %v139_v54  ;;  %v151_v61 = vand.u32 2147483648, %v139_v54  ;;  %v149_v0 = vand.u32 2147483647, %v139_v54  ;;  %vm145_vm1 = vweird.f32 %v139_v54 }
  0xc9   :  { %v129_v3 = vmul.f32 %v128_v62, %v116_v28  ;;  %v248_v28 = vld [vmem:[#allocation7 + $0x28] sm:$0xff] }
  0xca   :  { %v152_v2 = vor.u32 1.1754944e-38, %v151_v61  ;;  %vm150_vm3 = vcmp.eq.f32.partialorder %v149_v0, 8.507059e+37  ;;  %273 = vmatpush.msra.mxu2 %v248_v28 }
  0xcc   :  { %274 = vmatpush.msra.mxu2 %v247_v31 }
  0xce   :  { %v314_v57 = vpop.eup %313  ;;  %275 = vmatpush.msra.mxu2 %v246_v34 }
  0xcf   :  { %v141_v59 = vmul.f32 %v314_v57, %v139_v54  ;;  %vm146_vm0 = vweird.f32 %v314_v57 }
  0xd0   :  { %vm147_vm2 = vmor %vm145_vm1, %vm146_vm0  ;;  %276 = vmatpush.msra.mxu2 %v245_v36 }
  0xd1   :  { %v142_v60 = vsub.f32 1.0, %v141_v59 }
  0xd2   :  { %277 = vmatpush.msra.mxu2 %v244_v39 }
  0xd3   :  { %v143_v63 = vmul.f32 %v314_v57, %v142_v60 }
  0xd4   :  { %278 = vmatpush.msra.mxu2 %v243_v41 }
  0xd5   :  { %v144_v1 = vadd.f32 %v314_v57, %v143_v63 }
  0xd7   :  { %v148_v4 = vsel %vm147_vm2, %v314_v57, %v144_v1 }
  0xd8   :  { %v153_v5 = vsel %vm150_vm3, %v152_v2, %v148_v4 }
  0xd9   :  { %v154_v6 = vmul.f32 %v153_v5, %v129_v3  ;;  %v312_v5 = vld [vmem:[%s495_s6] ss:$0 sm:$0xff] }
  0xdb   :  { %v302_v7 = vclamps-f32 %v154_v6, 1.0 }
  0xdd   :  { %v157_v9 = vadd.f32 1.0, %v302_v7 }
  0xdf   :  { %v158_v10 = vmul.f32 %v157_v9, %v115_v8 }
  0xe1   :  { %195 = vmatmul.f32.vlgmr.msra.gmra.mxu1 %v158_v10 }
 0x15e   :  { %v196_v18 = vpop.f32.mrf.mxu1 }
 0x15f   :  { %v197_v19 = vadd.f32 %v311_v14, %v196_v18 }
 0x161   :  { %v200_v21 = vmul.f32 0.70710677, %v197_v19  ;;  %v199_v2 = vmul.f32 0.5, %v197_v19 }
 0x163   :  { %v201_v23 = vmul.f32 %v200_v21, %v200_v21 }
 0x165   :  { %v202_v25 = vmin.f32 %v201_v23, 16.0 }
 0x167   :  { %v203_v27 = vmul.f32 2.1237322e-06, %v202_v25  ;;  %v214_v29 = vmul.f32 3.8918573e-05, %v202_v25 }
 0x169   :  { %v204_v30 = vadd.f32 0.00028619796, %v203_v27  ;;  %v215_v32 = vadd.f32 0.001143296, %v214_v29 }
 0x16b   :  { %v205_v33 = vmul.f32 %v204_v30, %v202_v25  ;;  %v216_v35 = vmul.f32 %v215_v32, %v202_v25 }
 0x16d   :  { %v217_v37 = vadd.f32 0.014752088, %v216_v35  ;;  %v206_v38 = vadd.f32 0.0036580483, %v205_v33 }
 0x16f   :  { %v218_v40 = vmul.f32 %v217_v37, %v202_v25  ;;  %v207_v43 = vmul.f32 %v206_v38, %v202_v25 }
 0x171   :  { %v219_v42 = vadd.f32 0.112945676, %v218_v40  ;;  %v208_v46 = vadd.f32 0.05243302, %v207_v43 }
 0x173   :  { %v220_v44 = vmul.f32 %v219_v42, %v202_v25  ;;  %v209_v49 = vmul.f32 %v208_v46, %v202_v25 }
 0x175   :  { %v221_v45 = vadd.f32 0.4994258, %v220_v44  ;;  %v210_v50 = vadd.f32 0.18741608, %v209_v49 }
 0x177   :  { %v222_v47 = vmul.f32 %v221_v45, %v202_v25  ;;  %v211_v52 = vmul.f32 %v210_v50, %v202_v25 }
 0x179   :  { %v223_v48 = vadd.f32 1.0, %v222_v47  ;;  %v212_v56 = vadd.f32 1.1283791, %v211_v52 }
 0x17b   :  { %315 = vrcp.f32 %v223_v48  ;;  %v235_v55 = vand.u32 2147483648, %v223_v48  ;;  %v233_v58 = vand.u32 2147483647, %v223_v48  ;;  %vm229_vm5 = vweird.f32 %v223_v48 }
 0x17c   :  { %v213_v61 = vmul.f32 %v212_v56, %v200_v21 }
 0x17d   :  { %v236_v60 = vor.u32 1.1754944e-38, %v235_v55  ;;  %vm234_vm7 = vcmp.eq.f32.partialorder %v233_v58, 8.507059e+37 }
 0x181   :  { %v316_v51 = vpop.eup %315 }
 0x182   :  { %v225_v53 = vmul.f32 %v316_v51, %v223_v48  ;;  %vm230_vm4 = vweird.f32 %v316_v51 }
 0x183   :  { %vm231_vm6 = vmor %vm229_vm5, %vm230_vm4 }
 0x184   :  { %v226_v54 = vsub.f32 1.0, %v225_v53 }
 0x186   :  { %v227_v57 = vmul.f32 %v316_v51, %v226_v54 }
 0x188   :  { %v228_v59 = vadd.f32 %v316_v51, %v227_v57 }
 0x18a   :  { %v232_v62 = vsel %vm231_vm6, %v316_v51, %v228_v59 }
 0x18b   :  { %v237_v63 = vsel %vm234_vm7, %v236_v60, %v232_v62 }
 0x18c   :  { %v238_v0 = vmul.f32 %v237_v63, %v213_v61 }
 0x18e   :  { %v303_v1 = vclamps-f32 %v238_v0, 1.0 }
 0x190   :  { %v241_v3 = vadd.f32 1.0, %v303_v1 }
 0x192   :  { %v242_v4 = vmul.f32 %v241_v3, %v199_v2 }
 0x194   :  { %279 = vmatmul.f32.vlgmr.msra.gmra.mxu2 %v242_v4 }
 0x217   :  { %v280_v6 = vpop.f32.mrf.mxu2 }
 0x218   :  { %v281_v7 = vadd.f32 %v312_v5, %v280_v6 }
 0x21a   :  { %283 = vst [vmem:[#allocation8] sm:$0xff] %v281_v7 }
 0x21b   :  { %294 = dma.vmem_to_hbm [thread:$0]  %s290_s21, 128, %s292_s24, [#allocation4]  }
 0x21c   :  { %417 = dma.done.wait [#allocation4], 128  }
 0x21d   :  { %418 = vsyncadd [#allocation4], 4294967168 }
 0x21e   :  { %299 = vsyncpa [#allocation3], 1 }
 0x21f   :  { %300 = vsyncpa [#allocation6], 1 }
 0x220   :  { %301 = vsyncpa [#allocation4], 1 }

</bundles_post_ra>
